<compile_context>
chip_gen: v5e
topology: v5e:2x2
jax: 0.10.0
libtpu: 0.0.40
codegen_flags: <defaults>
</compile_context>

<pallas_src>
import functools

import jax
import jax.numpy as jnp
from jax import lax
from jax.experimental import pallas as pl
from jax.experimental.pallas import tpu as pltpu

_EPS = 1e-12  # l2normalize eps (matches the PyTorch reference)


def _round_up(x, m):
    return (x + m - 1) // m * m


# ---------------------------------------------------------------------------
# Kernel 1: power iteration + sigma
# ---------------------------------------------------------------------------
def _power_iter_kernel(w_ref, u_ref, v_ref, u_out_ref, v_out_ref, sigma_ref,
                       *, power_iterations):
    w = w_ref[...]            # (Hp, Wp) f32, zero-padded copy of W.view(H, -1)
    u = u_ref[...]            # (1, Hp)
    v = v_ref[...]            # (1, Wp)

    def _l2n(x):
        n = jnp.sqrt(jnp.sum(x * x, axis=1, keepdims=True))
        return x / (n + _EPS)

    # power_iterations is a small static int -> unrolled, LLO sees everything.
    for _ in range(power_iterations):
        # v = l2normalize(W^T u) ; u = l2normalize(W v)
        v = _l2n(jnp.dot(u, w, preferred_element_type=jnp.float32))           # (1, Wp)
        u = _l2n(jnp.einsum('bw,hw->bh', v, w,
                            preferred_element_type=jnp.float32))              # (1, Hp)

    wv = jnp.einsum('bw,hw->bh', v, w, preferred_element_type=jnp.float32)    # (1, Hp)
    sigma = jnp.sum(u * wv, axis=1, keepdims=True)                            # (1, 1)

    u_out_ref[...] = u
    v_out_ref[...] = v
    sigma_ref[...] = sigma


def spectral_power_iteration(w_mat, u, v, *, power_iterations=1):
    """Power-iteration update for w_mat (H, W). Returns (u_new (H,), v_new (W,), sigma (1,1))."""
    H, W = w_mat.shape
    Hp = _round_up(H, 8)
    Wp = _round_up(W, 128)

    w_p = jnp.pad(w_mat.astype(jnp.float32), ((0, Hp - H), (0, Wp - W)))
    u_p = jnp.pad(u.astype(jnp.float32).reshape(1, H), ((0, 0), (0, Hp - H)))
    v_p = jnp.pad(v.astype(jnp.float32).reshape(1, W), ((0, 0), (0, Wp - W)))

    u_o, v_o, sigma = pl.pallas_call(
        functools.partial(_power_iter_kernel, power_iterations=power_iterations),
        out_shape=(
            jax.ShapeDtypeStruct((1, Hp), jnp.float32),
            jax.ShapeDtypeStruct((1, Wp), jnp.float32),
            jax.ShapeDtypeStruct((1, 1), jnp.float32),
        ),
    )(w_p, u_p, v_p)

    return u_o[0, :H], v_o[0, :W], sigma


# ---------------------------------------------------------------------------
# Kernel 2: conv (wrapped module) as a lane-dense, spatially tiled matmul
# ---------------------------------------------------------------------------
def _sn_conv_kernel(p_ref, w_ref, b_ref, sigma_ref, o_ref):
    # p_ref: (1, TP, Kp)  w_ref: (Kp, Coutp)  b_ref: (1, Coutp)  sigma_ref: (1,1) SMEM
    inv_sigma = 1.0 / sigma_ref[0, 0]          # scalar recip, then vector multiply
    w = w_ref[...] * inv_sigma                 # weight / sigma (spectral normalization)
    y = jnp.dot(p_ref[0], w, preferred_element_type=jnp.float32)
    o_ref[0] = (y + b_ref[...]).astype(o_ref.dtype)


def sn_conv2d(x_nchw, w_bar, b, sigma, *, stride, padding):
    """nn.Conv2d forward with spectrally normalized weight (w_bar / sigma), zero padding."""
    N = x_nchw.shape[0]
    Cout, Cin, KH, KW = w_bar.shape

    x = jnp.transpose(x_nchw, (0, 2, 3, 1)).astype(jnp.float32)       # NHWC
    if padding > 0:
        x = jnp.pad(x, ((0, 0), (padding, padding), (padding, padding), (0, 0)))
    _, Hpad, Wpad, _ = x.shape
    Ho = (Hpad - KH) // stride + 1
    Wo = (Wpad - KW) // stride + 1
    P = Ho * Wo
    K = KH * KW * Cin

    # TODO(synk): im2col still happens in the wrapper (KH*KW-amplified HBM slab);
    # reading haloed NHWC tiles and looping over (kh, kw) inside the kernel would
    # cut HBM reads further.
    cols = []
    for kh in range(KH):
        for kw in range(KW):
            cols.append(x[:, kh:kh + stride * (Ho - 1) + 1:stride,
                             kw:kw + stride * (Wo - 1) + 1:stride, :])
    patches = jnp.concatenate(cols, axis=-1).reshape(N, P, K)

    # weight -> (kh, kw, cin, cout) order to match the im2col column order
    w_conv = jnp.transpose(w_bar, (2, 3, 1, 0)).reshape(K, Cout).astype(jnp.float32)

    # lane/sublane padding: Cout -> multiple of 128 lanes (unmasked vst), K -> mult of 8
    Kp = _round_up(K, 8)
    Coutp = _round_up(Cout, 128)

    # spatial tile: as large as possible under a conservative VMEM budget so the
    # same tiling is safe on v7x (64 MiB physical / 32 MiB default scoped VMEM).
    budget = 24 * 1024 * 1024
    fixed = 2 * 4 * Kp * Coutp + 2 * 4 * Coutp            # double-buffered weight + bias
    row_bytes = 2 * 4 * (Kp + Coutp)                      # double-buffered patch + out rows
    tp_cap = max(8, (budget - fixed) // row_bytes)
    TP = int(min(512, _round_up(P, 8), (tp_cap // 8) * 8))
    TP = max(TP, 8)
    Pp = _round_up(P, TP)

    patches_p = jnp.pad(patches, ((0, 0), (0, Pp - P), (0, Kp - K)))
    w_p = jnp.pad(w_conv, ((0, Kp - K), (0, Coutp - Cout)))
    b_p = jnp.pad(b.astype(jnp.float32).reshape(1, Cout), ((0, 0), (0, Coutp - Cout)))

    out = pl.pallas_call(
        _sn_conv_kernel,
        out_shape=jax.ShapeDtypeStruct((N, Pp, Coutp), jnp.float32),
        grid=(N, Pp // TP),
        in_specs=[
            pl.BlockSpec((1, TP, Kp), lambda n, p: (n, p, 0)),
            pl.BlockSpec((Kp, Coutp), lambda n, p: (0, 0)),
            pl.BlockSpec((1, Coutp), lambda n, p: (0, 0)),
            pl.BlockSpec(memory_space=pltpu.MemorySpace.SMEM),
        ],
        out_specs=pl.BlockSpec((1, TP, Coutp), lambda n, p: (n, p, 0)),
        compiler_params=pltpu.CompilerParams(
            dimension_semantics=("parallel", "parallel")),
    )(patches_p, w_p, b_p, sigma)

    out = out[:, :P, :Cout].reshape(N, Ho, Wo, Cout)
    return jnp.transpose(out, (0, 3, 1, 2))               # back to NCHW


# ---------------------------------------------------------------------------
# Module: SpectralNorm(nn.Conv2d(...))
# ---------------------------------------------------------------------------
class SpectralNormConv2d:
    """SpectralNorm(nn.Conv2d(in_ch, out_ch, k, stride, padding)) forward (pure)."""

    def __init__(self, in_ch, out_ch, kernel_size, stride, padding, key,
                 power_iterations=1):
        self.stride = stride
        self.padding = padding
        self.power_iterations = power_iterations

        kw_key, kb_key, ku_key, kv_key = jax.random.split(key, 4)
        fan_in = in_ch * kernel_size * kernel_size
        bound = 1.0 / (fan_in ** 0.5)
        # w_bar in PyTorch Conv2d layout (Cout, Cin, KH, KW)
        self.w_bar = jax.random.uniform(
            kw_key, (out_ch, in_ch, kernel_size, kernel_size),
            minval=-bound, maxval=bound, dtype=jnp.float32)
        self.b = jax.random.uniform(kb_key, (out_ch,),
                                    minval=-bound, maxval=bound, dtype=jnp.float32)

        height = out_ch
        width = in_ch * kernel_size * kernel_size
        u0 = jax.random.normal(ku_key, (height,), dtype=jnp.float32)
        v0 = jax.random.normal(kv_key, (width,), dtype=jnp.float32)
        self.u = u0 / (jnp.linalg.norm(u0) + _EPS)
        self.v = v0 / (jnp.linalg.norm(v0) + _EPS)

    def __call__(self, x, u, v):
        """Returns (out, u_new, v_new); u/v are the updated power-iteration buffers."""
        height = self.w_bar.shape[0]
        w_mat = self.w_bar.reshape(height, -1)             # == w.view(height, -1)
        u_new, v_new, sigma = spectral_power_iteration(
            w_mat, u, v, power_iterations=self.power_iterations)
        out = sn_conv2d(x, self.w_bar, self.b, sigma,
                        stride=self.stride, padding=self.padding)
        return out, u_new, v_new


# ---------------------------------------------------------------------------
# Pure-JAX reference (for correctness check)
# ---------------------------------------------------------------------------
def _reference_forward(x, w_bar, b, u, v, *, stride, padding, power_iterations):
    h = w_bar.shape[0]
    w_mat = w_bar.reshape(h, -1)
    for _ in range(power_iterations):
        v = jnp.dot(w_mat.T, u, precision=lax.Precision.HIGHEST)
        v = v / (jnp.linalg.norm(v) + _EPS)
        u = jnp.dot(w_mat, v, precision=lax.Precision.HIGHEST)
        u = u / (jnp.linalg.norm(u) + _EPS)
    sigma = jnp.dot(u, jnp.dot(w_mat, v, precision=lax.Precision.HIGHEST),
                    precision=lax.Precision.HIGHEST)
    w_n = w_bar / sigma
    out = lax.conv_general_dilated(
        x, w_n, window_strides=(stride, stride),
        padding=[(padding, padding), (padding, padding)],
        dimension_numbers=('NCHW', 'OIHW', 'NCHW'),
        precision=lax.Precision.HIGHEST)
    return out + b.reshape(1, -1, 1, 1), u, v


# ---------------------------------------------------------------------------
# Demo
# ---------------------------------------------------------------------------
if __name__ == "__main__":
    key = jax.random.PRNGKey(0)
    k_x, k_params = jax.random.split(key)

    # SpectralNorm(nn.Conv2d(4, 8, kernel_size=4, stride=2, padding=1)) on a
    # (2, 4, 16, 16) input — the canonical 'sn' usage in networks.py.
    x = jax.random.normal(k_x, (2, 4, 16, 16), dtype=jnp.float32)
    layer = SpectralNormConv2d(in_ch=4, out_ch=8, kernel_size=4, stride=2,
                               padding=1, key=k_params, power_iterations=1)

    fwd = jax.jit(layer.__call__)
    out, u_new, v_new = fwd(x, layer.u, layer.v)
    out = jax.block_until_ready(out)

    # 16x16, k=4, s=2, p=1 -> 8x8 spatial; 4 -> 8 channels
    assert out.shape == (2, 8, 8, 8), out.shape
    assert bool(jnp.all(jnp.isfinite(out)))

    ref_out, ref_u, ref_v = _reference_forward(
        x, layer.w_bar, layer.b, layer.u, layer.v,
        stride=2, padding=1, power_iterations=1)
    err = float(jnp.max(jnp.abs(out - ref_out)))
    err_u = float(jnp.max(jnp.abs(u_new - ref_u)))
    err_v = float(jnp.max(jnp.abs(v_new - ref_v)))
    assert err < 2e-3, err
    assert err_u < 2e-3 and err_v < 2e-3, (err_u, err_v)

    print("KERNEL_OK")
</pallas_src>

<mosaic_0001>
module attributes {stable_mosaic.version = 11 : i64} {
  func.func @_sn_conv_kernel(%arg0: i32, %arg1: i32, %arg2: memref<1x64x64xf32, #tpu.memory_space<vmem>>, %arg3: memref<64x128xf32, #tpu.memory_space<vmem>>, %arg4: memref<1x128xf32, #tpu.memory_space<vmem>>, %arg5: memref<1x1xf32, #tpu.memory_space<smem>>, %arg6: memref<1x64x128xf32, #tpu.memory_space<vmem>>) attributes {dimension_semantics = [#tpu.dimension_semantics<parallel>, #tpu.dimension_semantics<parallel>], iteration_bounds = array<i64: 2, 1>, scalar_prefetch = 0 : i64, scratch_operands = 0 : i64, tpu.core_type = #tpu.core_type<tc>, window_params = [{transform_indices = @transform_0, window_bounds = array<i64: 1, 64, 64>}, {pipeline_mode = #tpu.pipeline_mode<synchronous>, transform_indices = @transform_1, window_bounds = array<i64: 64, 128>}, {pipeline_mode = #tpu.pipeline_mode<synchronous>, transform_indices = @transform_2, window_bounds = array<i64: 1, 128>}, {transform_indices = @transform_3, window_bounds = array<i64: 1, 1>}, {transform_indices = @transform_4, window_bounds = array<i64: 1, 64, 128>}]} {
    %c0 = arith.constant 0 : index
    %c0_0 = arith.constant 0 : index
    %0 = memref.load %arg5[%c0, %c0_0] : memref<1x1xf32, #tpu.memory_space<smem>>
    %cst = arith.constant 1.000000e+00 : f32
    %1 = arith.divf %cst, %0 : f32
    %c0_1 = arith.constant 0 : index
    %c0_2 = arith.constant 0 : index
    %2 = vector.load %arg3[%c0_1, %c0_2] : memref<64x128xf32, #tpu.memory_space<vmem>>, vector<64x128xf32>
    %3 = vector.broadcast %1 : f32 to vector<64x128xf32>
    %4 = arith.mulf %2, %3 : vector<64x128xf32>
    %c0_3 = arith.constant 0 : index
    %c0_4 = arith.constant 0 : index
    %c0_5 = arith.constant 0 : index
    %5 = vector.load %arg2[%c0_3, %c0_4, %c0_5] : memref<1x64x64xf32, #tpu.memory_space<vmem>>, vector<1x64x64xf32>
    %6 = vector.shape_cast %5 : vector<1x64x64xf32> to vector<64x64xf32>
    %cst_6 = arith.constant dense<0.000000e+00> : vector<64x128xf32>
    %7 = tpu.matmul %6, %4, %cst_6 {dimension_numbers = #tpu.dot_dimension_numbers<[1], [0], [0], [1], [0, 0, 1, 1], [], []>} : vector<64x64xf32>, vector<64x128xf32>, vector<64x128xf32> -> vector<64x128xf32>
    %c0_7 = arith.constant 0 : index
    %c0_8 = arith.constant 0 : index
    %8 = vector.load %arg4[%c0_7, %c0_8] : memref<1x128xf32, #tpu.memory_space<vmem>>, vector<1x128xf32>
    %9 = vector.broadcast %8 : vector<1x128xf32> to vector<64x128xf32>
    %10 = arith.addf %7, %9 : vector<64x128xf32>
    %c0_9 = arith.constant 0 : index
    %c0_10 = arith.constant 0 : index
    %c0_11 = arith.constant 0 : index
    %11 = vector.load %arg6[%c0_9, %c0_10, %c0_11] : memref<1x64x128xf32, #tpu.memory_space<vmem>>, vector<1x64x128xf32>
    %12 = vector.shape_cast %11 : vector<1x64x128xf32> to vector<64x128xf32>
    %13 = vector.shape_cast %10 : vector<64x128xf32> to vector<1x64x128xf32>
    tpu.vector_store %arg6[%c0_9, %c0_10, %c0_11], %13 {strides = array<i32>} : memref<1x64x128xf32, #tpu.memory_space<vmem>>, vector<1x64x128xf32>,
    return
  }
  func.func @transform_0(%arg0: i32, %arg1: i32) -> (i32, i32, i32) {
    %c0_i32 = arith.constant 0 : i32
    %c0_i32_0 = arith.constant 0 : i32
    return %arg0, %arg1, %c0_i32 : i32, i32, i32
  }
  func.func @transform_1(%arg0: i32, %arg1: i32) -> (i32, i32) {
    %c0_i32 = arith.constant 0 : i32
    %c0_i32_0 = arith.constant 0 : i32
    %c0_i32_1 = arith.constant 0 : i32
    return %c0_i32, %c0_i32_0 : i32, i32
  }
  func.func @transform_2(%arg0: i32, %arg1: i32) -> (i32, i32) {
    %c0_i32 = arith.constant 0 : i32
    %c0_i32_0 = arith.constant 0 : i32
    %c0_i32_1 = arith.constant 0 : i32
    return %c0_i32, %c0_i32_0 : i32, i32
  }
  func.func @transform_3(%arg0: i32, %arg1: i32) -> (i32, i32) {
    %c0_i32 = arith.constant 0 : i32
    %c0_i32_0 = arith.constant 0 : i32
    %c0_i32_1 = arith.constant 0 : i32
    return %c0_i32, %c0_i32_0 : i32, i32
  }
  func.func @transform_4(%arg0: i32, %arg1: i32) -> (i32, i32, i32) {
    %c0_i32 = arith.constant 0 : i32
    %c0_i32_0 = arith.constant 0 : i32
    return %arg0, %arg1, %c0_i32 : i32, i32, i32
  }
}

module attributes {stable_mosaic.version = 11 : i64} {
  func.func @_power_iter_kernel(%arg0: memref<8x128xf32, #tpu.memory_space<vmem>>, %arg1: memref<1x8xf32, #tpu.memory_space<vmem>>, %arg2: memref<1x128xf32, #tpu.memory_space<vmem>>, %arg3: memref<1x8xf32, #tpu.memory_space<vmem>>, %arg4: memref<1x128xf32, #tpu.memory_space<vmem>>, %arg5: memref<1x1xf32, #tpu.memory_space<vmem>>) attributes {dimension_semantics = [], scalar_prefetch = 0 : i64, scratch_operands = 0 : i64, tpu.core_type = #tpu.core_type<tc>} {
    %c0 = arith.constant 0 : index
    %c0_0 = arith.constant 0 : index
    %0 = vector.load %arg0[%c0, %c0_0] : memref<8x128xf32, #tpu.memory_space<vmem>>, vector<8x128xf32>
    %c0_1 = arith.constant 0 : index
    %c0_2 = arith.constant 0 : index
    %1 = vector.load %arg1[%c0_1, %c0_2] : memref<1x8xf32, #tpu.memory_space<vmem>>, vector<1x8xf32>
    %cst = arith.constant dense<0.000000e+00> : vector<1x128xf32>
    %2 = tpu.matmul %1, %0, %cst {dimension_numbers = #tpu.dot_dimension_numbers<[1], [0], [0], [1], [0, 0, 1, 1], [], []>} : vector<1x8xf32>, vector<8x128xf32>, vector<1x128xf32> -> vector<1x128xf32>
    %3 = arith.mulf %2, %2 : vector<1x128xf32>
    %cst_3 = arith.constant dense<0.000000e+00> : vector<1xf32>
    %4 = vector.multi_reduction <add>, %3, %cst_3 [1] : vector<1x128xf32> to vector<1xf32>
    %5 = vector.shape_cast %4 : vector<1xf32> to vector<1x1xf32>
    %6 = math.sqrt %5 : vector<1x1xf32>
    %cst_4 = arith.constant 9.99999996E-13 : f32
    %7 = vector.broadcast %cst_4 : f32 to vector<1x1xf32>
    %8 = arith.addf %6, %7 : vector<1x1xf32>
    %9 = vector.broadcast %8 : vector<1x1xf32> to vector<1x128xf32>
    %10 = arith.divf %2, %9 : vector<1x128xf32>
    "tpu.trace_start"() <{level = 10 : i32, message = "bw,hw->bh"}> : () -> ()
    %cst_5 = arith.constant dense<0.000000e+00> : vector<1x8xf32>
    %11 = tpu.matmul %10, %0, %cst_5 {dimension_numbers = #tpu.dot_dimension_numbers<[1], [1], [0], [0], [0, 0, 1, 0], [], []>} : vector<1x128xf32>, vector<8x128xf32>, vector<1x8xf32> -> vector<1x8xf32>
    "tpu.trace_stop"() : () -> ()
    %12 = arith.mulf %11, %11 : vector<1x8xf32>
    %cst_6 = arith.constant dense<0.000000e+00> : vector<1xf32>
    %13 = vector.multi_reduction <add>, %12, %cst_6 [1] : vector<1x8xf32> to vector<1xf32>
    %14 = vector.shape_cast %13 : vector<1xf32> to vector<1x1xf32>
    %15 = math.sqrt %14 : vector<1x1xf32>
    %cst_7 = arith.constant 9.99999996E-13 : f32
    %16 = vector.broadcast %cst_7 : f32 to vector<1x1xf32>
    %17 = arith.addf %15, %16 : vector<1x1xf32>
    %18 = vector.broadcast %17 : vector<1x1xf32> to vector<1x8xf32>
    %19 = arith.divf %11, %18 : vector<1x8xf32>
    "tpu.trace_start"() <{level = 10 : i32, message = "bw,hw->bh"}> : () -> ()
    %cst_8 = arith.constant dense<0.000000e+00> : vector<1x8xf32>
    %20 = tpu.matmul %10, %0, %cst_8 {dimension_numbers = #tpu.dot_dimension_numbers<[1], [1], [0], [0], [0, 0, 1, 0], [], []>} : vector<1x128xf32>, vector<8x128xf32>, vector<1x8xf32> -> vector<1x8xf32>
    "tpu.trace_stop"() : () -> ()
    %21 = arith.mulf %19, %20 : vector<1x8xf32>
    %cst_9 = arith.constant dense<0.000000e+00> : vector<1xf32>
    %22 = vector.multi_reduction <add>, %21, %cst_9 [1] : vector<1x8xf32> to vector<1xf32>
    %23 = vector.shape_cast %22 : vector<1xf32> to vector<1x1xf32>
    %c0_10 = arith.constant 0 : index
    %c0_11 = arith.constant 0 : index
    %24 = vector.load %arg3[%c0_10, %c0_11] : memref<1x8xf32, #tpu.memory_space<vmem>>, vector<1x8xf32>
    tpu.vector_store %arg3[%c0_10, %c0_11], %19 {strides = array<i32>} : memref<1x8xf32, #tpu.memory_space<vmem>>, vector<1x8xf32>,
    %c0_12 = arith.constant 0 : index
    %c0_13 = arith.constant 0 : index
    %25 = vector.load %arg4[%c0_12, %c0_13] : memref<1x128xf32, #tpu.memory_space<vmem>>, vector<1x128xf32>
    tpu.vector_store %arg4[%c0_12, %c0_13], %10 {strides = array<i32>} : memref<1x128xf32, #tpu.memory_space<vmem>>, vector<1x128xf32>,
    %c0_14 = arith.constant 0 : index
    %c0_15 = arith.constant 0 : index
    %26 = vector.load %arg5[%c0_14, %c0_15] : memref<1x1xf32, #tpu.memory_space<vmem>>, vector<1x1xf32>
    tpu.vector_store %arg5[%c0_14, %c0_15], %23 {strides = array<i32>} : memref<1x1xf32, #tpu.memory_space<vmem>>, vector<1x1xf32>,
    return
  }
}

</mosaic_0001>

<bundles_post_ra>
// kernel: a_call__.2
= control target key start
LH: loop header
LB: loop body
LE: loop exit
PB: predicated region body
PF: predicated region fallthrough
CT: control target
= control target key end

     0   :  { %11 = vsyncpa [#allocation3], 0  ;;  %vm21_vm0 = vcmask 64512   ;;  %s288_s0 = inlined_call_operand.vmem [shape: f32[8,128], index: 0, kind: input, shape index: {}]   ;;  %s289_s1 = inlined_call_operand.vmem [shape: f32[1,8], index: 1, kind: input, shape index: {}]   ;;  %s290_s2 = inlined_call_operand.vmem [shape: f32[1,128], index: 2, kind: input, shape index: {}]   ;;  %s291_s3 = inlined_call_operand.hbm [shape: f32[1,8], index: 3, kind: output, shape index: {0}]   ;;  %s292_s4 = inlined_call_operand.vmem [shape: f32[1,128], index: 4, kind: output, shape index: {1}]   ;;  %s293_s5 = inlined_call_operand.hbm [shape: f32[1,1], index: 5, kind: output, shape index: {2}]  }
   0x1   :  { %v19_v0 = vld [vmem:[%s288_s0] sm:$0xff] }
   0x2   :  { %v20_v1 = vld [vmem:[%s289_s1] sm:$0x1] }
   0x3   :  { %12 = vsyncpa [#allocation5], 0  ;;  %40 = vmatpush.msra.mxu0 %v19_v0  ;;  %93 = vmatpush.xpose.msra.mxu1 %v19_v0  ;;  %vm46_vm1 = vcmask 1040384   ;;  %vm99_vm8 = vcmask 57344   ;;  %s238_s2 = smov [#allocation2]   ;;  %s146_s24 = sshll.u32 %s291_s3, 4  ;;  %s147_s24 = int_to_ptr.hbm [resolvable:$true] %s146_s24 }
   0x4   :  { %175 = vmatmul.msk.f32.vlgmr.msra.gmra.mxu0 %vm21_vm0, %v20_v1  ;;  %s239_s25 = smov [#allocation4]   ;;  %s159_s29 = sshll.u32 %s293_s5, 4  ;;  %vm137_vm15 = vcmask 0   ;;  %s160_s29 = int_to_ptr.hbm [resolvable:$true] %s159_s29 }
   0x5   :  { %s157_s26 = sshll.u32 %s239_s25, 4  ;;  %s158_s26 = int_to_ptr.vmem [resolvable:$true] %s157_s26 }
  0x81   :  { %v42_v2 = vpop.f32.mrf.mxu0 }
  0x82   :  { %v45_v3 = vmul.f32 %v42_v2, %v42_v2 }
  0x84   :  { %v47_v4 = vsel %vm46_vm1, %v45_v3, 0.0 }
  0x85   :  { %48 = vadd.xlane.f32.xlu0 %v47_v4 }
  0xf8   :  { %v49_v5 = vpop.xlane.xlu0 %48 }
  0xf9   :  { %178 = vrsqrt.f32 %v49_v5  ;;  %vm57_vm2 = vcmp.eq.f32.partialorder %v49_v5, inf  ;;  %v60_v13 = vand.u32 2147483648, %v49_v5  ;;  %vm59_vm3 = vcmp.eq.f32.partialorder %v49_v5, 0.0 }
  0xff   :  { %v179_v6 = vpop.eup %178 }
 0x100   :  { %v51_v7 = vmul.f32 %v179_v6, %v49_v5 }
 0x102   :  { %v52_v8 = vmul.f32 %v179_v6, %v51_v7 }
 0x104   :  { %v53_v9 = vmul.f32 0.5, %v52_v8 }
 0x106   :  { %v54_v10 = vsub.f32 1.5, %v53_v9 }
 0x108   :  { %v55_v11 = vmul.f32 %v179_v6, %v54_v10 }
 0x10a   :  { %v56_v12 = vmul.f32 %v55_v11, %v49_v5 }
 0x10c   :  { %v58_v14 = vsel %vm57_vm2, %v49_v5, %v56_v12 }
 0x10d   :  { %v61_v15 = vsel %vm59_vm3, %v60_v13, %v58_v14 }
 0x10e   :  { %v62_v16 = vadd.f32 1e-12, %v61_v15 }
 0x110   :  { %180 = vrcp.f32 %v62_v16  ;;  %v74_v20 = vand.u32 2147483648, %v62_v16  ;;  %v72_v22 = vand.u32 2147483647, %v62_v16  ;;  %vm68_vm5 = vweird.f32 %v62_v16 }
 0x112   :  { %v75_v24 = vor.u32 1.1754944e-38, %v74_v20  ;;  %vm73_vm7 = vcmp.eq.f32.partialorder %v72_v22, 8.507059e+37 }
 0x116   :  { %v181_v17 = vpop.eup %180 }
 0x117   :  { %v64_v18 = vmul.f32 %v181_v17, %v62_v16  ;;  %vm69_vm4 = vweird.f32 %v181_v17 }
 0x118   :  { %vm70_vm6 = vmor %vm68_vm5, %vm69_vm4 }
 0x119   :  { %v65_v19 = vsub.f32 1.0, %v64_v18 }
 0x11b   :  { %v66_v21 = vmul.f32 %v181_v17, %v65_v19 }
 0x11d   :  { %v67_v23 = vadd.f32 %v181_v17, %v66_v21 }
 0x11f   :  { %v71_v25 = vsel %vm70_vm6, %v181_v17, %v67_v23 }
 0x120   :  { %v76_v26 = vsel %vm73_vm7, %v75_v24, %v71_v25 }
 0x121   :  { %v77_v27 = vmul.f32 %v76_v26, %v42_v2 }
 0x123   :  { %94 = vmatmul.f32.vlgmr.msra.gmra.mxu1 %v77_v27  ;;  %136 = vst [vmem:[%s292_s4] sm:$0x1] %v77_v27  ;;  %s144_s4 = sshll.u32 %s238_s2, 4  ;;  %s145_s4 = int_to_ptr.vmem [resolvable:$true] %s144_s4 }
 0x1a0   :  { %v95_v28 = vpop.f32.mrf.mxu1 }
 0x1a1   :  { %v98_v29 = vmul.f32 %v95_v28, %v95_v28 }
 0x1a3   :  { %v100_v30 = vsel %vm99_vm8, %v98_v29, 0.0 }
 0x1a4   :  { %101 = vadd.xlane.f32.xlu0 %v100_v30 }
 0x217   :  { %v102_v31 = vpop.xlane.xlu0 %101 }
 0x218   :  { %182 = vrsqrt.f32 %v102_v31  ;;  %vm110_vm9 = vcmp.eq.f32.partialorder %v102_v31, inf  ;;  %v113_v39 = vand.u32 2147483648, %v102_v31  ;;  %vm112_vm10 = vcmp.eq.f32.partialorder %v102_v31, 0.0 }
 0x21e   :  { %v183_v32 = vpop.eup %182 }
 0x21f   :  { %v104_v33 = vmul.f32 %v183_v32, %v102_v31 }
 0x221   :  { %v105_v34 = vmul.f32 %v183_v32, %v104_v33 }
 0x223   :  { %v106_v35 = vmul.f32 0.5, %v105_v34 }
 0x225   :  { %v107_v36 = vsub.f32 1.5, %v106_v35 }
 0x227   :  { %v108_v37 = vmul.f32 %v183_v32, %v107_v36 }
 0x229   :  { %v109_v38 = vmul.f32 %v108_v37, %v102_v31 }
 0x22b   :  { %v111_v40 = vsel %vm110_vm9, %v102_v31, %v109_v38 }
 0x22c   :  { %v114_v41 = vsel %vm112_vm10, %v113_v39, %v111_v40 }
 0x22d   :  { %v115_v42 = vadd.f32 1e-12, %v114_v41 }
 0x22f   :  { %184 = vrcp.f32 %v115_v42  ;;  %v127_v46 = vand.u32 2147483648, %v115_v42  ;;  %v125_v48 = vand.u32 2147483647, %v115_v42  ;;  %vm121_vm12 = vweird.f32 %v115_v42 }
 0x231   :  { %v128_v50 = vor.u32 1.1754944e-38, %v127_v46  ;;  %vm126_vm14 = vcmp.eq.f32.partialorder %v125_v48, 8.507059e+37 }
 0x235   :  { %v185_v43 = vpop.eup %184 }
 0x236   :  { %v117_v44 = vmul.f32 %v185_v43, %v115_v42  ;;  %vm122_vm11 = vweird.f32 %v185_v43 }
 0x237   :  { %vm123_vm13 = vmor %vm121_vm12, %vm122_vm11 }
 0x238   :  { %v118_v45 = vsub.f32 1.0, %v117_v44 }
 0x23a   :  { %v119_v47 = vmul.f32 %v185_v43, %v118_v45 }
 0x23c   :  { %v120_v49 = vadd.f32 %v185_v43, %v119_v47 }
 0x23e   :  { %v124_v51 = vsel %vm123_vm13, %v185_v43, %v120_v49 }
 0x23f   :  { %v129_v52 = vsel %vm126_vm14, %v128_v50, %v124_v51 }
 0x240   :  { %v130_v53 = vmul.f32 %v129_v52, %v95_v28 }
 0x242   :  { %v131_v54 = vmul.f32 %v130_v53, %v95_v28  ;;  %135 = vst.msk [vmem:[#allocation2] sm:$0x1] %vm99_vm8, %v130_v53 }
 0x243   :  { %149 = dma.vmem_to_hbm [thread:$0]  %s145_s4, 16, %s147_s24, [#allocation3]  }
 0x244   :  { %v132_v55 = vsel %vm99_vm8, %v131_v54, 0.0 }
 0x245   :  { %133 = vadd.xlane.f32.xlu1 %v132_v55 }
 0x2b8   :  { %v134_v56 = vpop.xlane.xlu1 %133 }
 0x2b9   :  { %138 = vst.msk [vmem:[#allocation4] sm:$0x1] %vm137_vm15, %v134_v56 }
 0x2ba   :  { %162 = dma.vmem_to_hbm [thread:$0]  %s158_s26, 16, %s160_s29, [#allocation5]  }
 0x2bb   :  { %234 = dma.done.wait [#allocation3], 16  }
 0x2bc   :  { %235 = vsyncadd [#allocation3], 4294967280 }
 0x2bd   :  { %236 = dma.done.wait [#allocation5], 16  }
 0x2be   :  { %237 = vsyncadd [#allocation5], 4294967280 }
 0x2bf   :  { %173 = vsyncpa [#allocation3], 1 }
 0x2c0   :  { %174 = vsyncpa [#allocation5], 1 }

// kernel: a_call__.3
= control target key start
LH: loop header
LB: loop body
LE: loop exit
PB: predicated region body
PF: predicated region fallthrough
CT: control target
= control target key end

     0   :  { %s571_s17 = smov 0   ;;  %s573_s18 = smov 0   ;;  %s650_s0 = inlined_call_operand.vmem [shape: f32[2,64,64], index: 0, kind: input, shape index: {}]   ;;  %s651_s1 = inlined_call_operand.vmem [shape: f32[64,128], index: 1, kind: input, shape index: {}]   ;;  %s652_s2 = inlined_call_operand.vmem [shape: f32[1,128], index: 2, kind: input, shape index: {}]   ;;  %s653_s3 = inlined_call_operand.<no memory space> [shape: f32[1,1], index: 3, kind: input, shape index: {}]   ;;  %s654_s4 = inlined_call_operand.vmem [shape: f32[2,64,128], index: 4, kind: output, shape index: {}]  }
   0x1   :  { %9 = sst [smem:[#allocation2]] %s653_s3  ;;  %s575_s19 = smov 0  }
   0x2 LB: > { %s27_s3 = sadd.s32 1, %s537_s18  ;;  %p449_p0 = scmp.ge.s32.totalorder %s541_s19, 1  ;;  %s541_s19 = sphi %s575_s19, %s15_s19   ;;  %s537_s18 = sphi %s573_s18, %s656_s18   ;;  %s533_s17 = sphi %s571_s17, %s655_s17  }
   0x3   : > { %p29_p1 = scmp.ge.s32.totalorder %s27_s3, 2  ;;  %p184_p2 = scmp.lt.s32.totalorder %s541_s19, 3 }
   0x5   : > { %s658_s3 = smov (%p29_p1, %s27_s3), 0  ;;  %p185_p3 = pnand %p449_p0, %p184_p2 }
   0x6   : > { %s238_s20 = sld [smem:[#allocation2]] (!%p185_p3)  ;;  %p219_p4 = scmp.lt.s32.totalorder (!%p185_p3), %s533_s17, 1 }
   0x7   : > { %188 = sbr.rel (%p185_p3) target bundleno = 243 (0xf3), region = 36 }
   0xc   : > { %v239_v0 = vstv %s238_s20  ;;  %v262_v11 = vld [vmem:[%s651_s1 + $0x38] sm:$0xff]  ;;  %v261_v13 = vld [vmem:[%s651_s1 + $0x30] sm:$0xff]  ;;  %v260_v15 = vld [vmem:[%s651_s1 + $0x28] sm:$0xff]  ;;  %s660_s17 = smov (!%p219_p4, %s533_s17), 1  ;;  %vm284_vm4 = vcmask 523264  }
   0xd   : > { %517 = vrcp.f32 %v239_v0  ;;  %v251_v3 = vand.u32 2147483648, %v239_v0  ;;  %vm245_vm0 = vweird.f32 %v239_v0  ;;  %v249_v5 = vand.u32 2147483647, %v239_v0  ;;  %v259_v17 = vld [vmem:[%s651_s1 + $0x20] sm:$0xff]  ;;  %v258_v19 = vld [vmem:[%s651_s1 + $0x18] sm:$0xff]  ;;  %v257_v21 = vld [vmem:[%s651_s1 + $0x10] sm:$0xff] }
   0xe   : > { %v256_v23 = vld [vmem:[%s651_s1 + $0x8] sm:$0xff]  ;;  %s464_s10 = sshll.u32 %s660_s17, 6  ;;  %v255_v25 = vld [vmem:[%s651_s1] sm:$0xff] }
   0xf   : > { %v252_v7 = vor.u32 1.1754944e-38, %v251_v3  ;;  %vm250_vm3 = vcmp.eq.f32.partialorder %v249_v5, 8.507059e+37  ;;  %s226_s15 = scalar_lea.vmem %s650_s0, %s464_s10  ;;  %v516_v36 = vld [vmem:[%s652_s2] ss:$0 sm:$0xff] }
  0x10   : > { %v276_v28 = vld [vmem:[%s226_s15 + $0x20] sm:$0xff]  ;;  %v278_v29 = vld [vmem:[%s226_s15 + $0x30] sm:$0xff]  ;;  %v277_v32 = vld [vmem:[%s226_s15 + $0x28] sm:$0xff] }
  0x11   : > { %v272_v30 = vld [vmem:[%s226_s15] sm:$0xff]  ;;  %v274_v31 = vld [vmem:[%s226_s15 + $0x10] sm:$0xff]  ;;  %v279_v33 = vld [vmem:[%s226_s15 + $0x38] sm:$0xff] }
  0x12   : > { %v273_v34 = vld [vmem:[%s226_s15 + $0x8] sm:$0xff]  ;;  %v275_v35 = vld [vmem:[%s226_s15 + $0x18] sm:$0xff] }
  0x13   : > { %v518_v1 = vpop.eup %517 }
  0x14   : > { %v241_v2 = vmul.f32 %v518_v1, %v239_v0  ;;  %vm246_vm1 = vweird.f32 %v518_v1 }
  0x15   : > { %vm247_vm2 = vmor %vm245_vm0, %vm246_vm1 }
  0x16   : > { %v242_v4 = vsub.f32 1.0, %v241_v2 }
  0x18   : > { %v243_v6 = vmul.f32 %v518_v1, %v242_v4 }
  0x1a   : > { %v244_v8 = vadd.f32 %v518_v1, %v243_v6 }
  0x1c   : > { %v248_v9 = vsel %vm247_vm2, %v518_v1, %v244_v8 }
  0x1d   : > { %v253_v10 = vsel %vm250_vm3, %v252_v7, %v248_v9 }
  0x1e   : > { %490 = vpush %v253_v10 }
  0x4f   : > { %s491_s23 = spop %490 }
  0x50   : > { %v263_v12 = vstv %s491_s23  ;;  %s236_s23 = scalar_lea.vmem %s654_s4, %s464_s10 }
  0x51   : > { %v271_v14 = vmul.f32 %v263_v12, %v262_v11  ;;  %v270_v16 = vmul.f32 %v263_v12, %v261_v13  ;;  %v269_v18 = vmul.f32 %v263_v12, %v260_v15  ;;  %v268_v20 = vmul.f32 %v263_v12, %v259_v17 }
  0x52   : > { %v267_v22 = vmul.f32 %v263_v12, %v258_v19  ;;  %v266_v24 = vmul.f32 %v263_v12, %v257_v21  ;;  %v265_v26 = vmul.f32 %v263_v12, %v256_v23  ;;  %v264_v27 = vmul.f32 %v263_v12, %v255_v25 }
  0x53   : > { %317 = vmatpush.msra.mxu0 %v271_v14  ;;  %466 = vmatpush.msra.mxu1 %v271_v14 }
  0x54   : > { %467 = vmatpush.msra.mxu2 %v271_v14  ;;  %468 = vmatpush.msra.mxu3 %v271_v14 }
  0x55   : > { %318 = vmatpush.msra.mxu0 %v270_v16  ;;  %469 = vmatpush.msra.mxu1 %v270_v16 }
  0x56   : > { %470 = vmatpush.msra.mxu2 %v270_v16  ;;  %471 = vmatpush.msra.mxu3 %v270_v16 }
  0x57   : > { %319 = vmatpush.msra.mxu0 %v269_v18  ;;  %472 = vmatpush.msra.mxu1 %v269_v18 }
  0x58   : > { %473 = vmatpush.msra.mxu2 %v269_v18  ;;  %474 = vmatpush.msra.mxu3 %v269_v18 }
  0x59   : > { %320 = vmatpush.msra.mxu0 %v268_v20  ;;  %475 = vmatpush.msra.mxu1 %v268_v20 }
  0x5a   : > { %476 = vmatpush.msra.mxu2 %v268_v20  ;;  %477 = vmatpush.msra.mxu3 %v268_v20 }
  0x5b   : > { %321 = vmatpush.msra.mxu0 %v267_v22  ;;  %478 = vmatpush.msra.mxu1 %v267_v22 }
  0x5c   : > { %479 = vmatpush.msra.mxu2 %v267_v22  ;;  %480 = vmatpush.msra.mxu3 %v267_v22 }
  0x5d   : > { %322 = vmatpush.msra.mxu0 %v266_v24  ;;  %481 = vmatpush.msra.mxu1 %v266_v24 }
  0x5e   : > { %482 = vmatpush.msra.mxu2 %v266_v24  ;;  %483 = vmatpush.msra.mxu3 %v266_v24 }
  0x5f   : > { %323 = vmatpush.msra.mxu0 %v265_v26  ;;  %484 = vmatpush.msra.mxu1 %v265_v26 }
  0x60   : > { %485 = vmatpush.msra.mxu2 %v265_v26  ;;  %486 = vmatpush.msra.mxu3 %v265_v26 }
  0x61   : > { %324 = vmatpush.msra.mxu0 %v264_v27  ;;  %487 = vmatpush.msra.mxu1 %v264_v27 }
  0x62   : > { %488 = vmatpush.msra.mxu2 %v264_v27  ;;  %489 = vmatpush.msra.mxu3 %v264_v27 }
  0x63   : > { %458 = vmatmul.msk.f32.vlgmr.msra.gmra.mxu2 %vm284_vm4, %v276_v28  ;;  %460 = vmatmul.msk.f32.vlgmr.msra.gmra.mxu3 %vm284_vm4, %v278_v29 }
  0x64   : > { %454 = vmatmul.msk.f32.vlgmr.msra.gmra.mxu0 %vm284_vm4, %v272_v30  ;;  %456 = vmatmul.msk.f32.vlgmr.msra.gmra.mxu1 %vm284_vm4, %v274_v31 }
  0x6b   : > { %459 = vmatmul.msk.f32.gmra.mxu2 %vm284_vm4, %v277_v32  ;;  %461 = vmatmul.msk.f32.gmra.mxu3 %vm284_vm4, %v279_v33 }
  0x6c   : > { %455 = vmatmul.msk.f32.gmra.mxu0 %vm284_vm4, %v273_v34  ;;  %457 = vmatmul.msk.f32.gmra.mxu1 %vm284_vm4, %v275_v35 }
  0xe1   : > { %v326_v37 = vpop.f32.mrf.mxu0  ;;  %v332_v38 = vpop.f32.mrf.mxu1 }
  0xe2   : > { %v327_v39 = vadd.f32 %v516_v36, %v326_v37  ;;  %v333_v40 = vadd.f32 %v516_v36, %v332_v38 }
  0xe4   : > { %350 = vst [vmem:[%s236_s23] sm:$0xff] %v327_v39 }
  0xe5   : > { %352 = vst [vmem:[%s236_s23 + $0x10] sm:$0xff] %v333_v40 }
  0xe6   : > { %v338_v41 = vpop.f32.mrf.mxu2  ;;  %v344_v42 = vpop.f32.mrf.mxu3 }
  0xe7   : > { %v339_v43 = vadd.f32 %v516_v36, %v338_v41  ;;  %v345_v44 = vadd.f32 %v516_v36, %v344_v42 }
  0xe9   : > { %354 = vst [vmem:[%s236_s23 + $0x20] sm:$0xff] %v339_v43  ;;  %v329_v45 = vpop.f32.mrf.mxu0  ;;  %v335_v46 = vpop.f32.mrf.mxu1 }
  0xea   : > { %356 = vst [vmem:[%s236_s23 + $0x30] sm:$0xff] %v345_v44  ;;  %v330_v47 = vadd.f32 %v516_v36, %v329_v45  ;;  %v336_v48 = vadd.f32 %v516_v36, %v335_v46 }
  0xec   : > { %351 = vst [vmem:[%s236_s23 + $0x8] sm:$0xff] %v330_v47 }
  0xed   : > { %353 = vst [vmem:[%s236_s23 + $0x18] sm:$0xff] %v336_v48 }
  0xee   : > { %v341_v49 = vpop.f32.mrf.mxu2  ;;  %v347_v50 = vpop.f32.mrf.mxu3 }
  0xef   : > { %v342_v51 = vadd.f32 %v516_v36, %v341_v49  ;;  %v348_v52 = vadd.f32 %v516_v36, %v347_v50 }
  0xf1   : > { %355 = vst [vmem:[%s236_s23 + $0x28] sm:$0xff] %v342_v51 }
  0xf2   : > { %357 = vst [vmem:[%s236_s23 + $0x38] sm:$0xff] %v348_v52 }
  0xf3 PF: > { %s15_s19 = sadd.s32 1, %s541_s19   ;;  %s655_s17 = smov %s537_s18 }
  0xf4   : > { %p12_p5 = scmp.ge.s32.totalorder %s15_s19, 4   ;;  %s656_s18 = smov %s658_s3 }
  0xf6   :  { %14 = sbr.rel (!%p12_p5) target bundleno = 2 (0x2), region = 66 }

</bundles_post_ra>
